<compile_context>
chip_gen: v7x
topology: tpu7x:2x2x1
jax: 0.10.0
libtpu: 0.0.40
codegen_flags: <defaults>
</compile_context>

<pallas_src>
import functools

import jax
import jax.numpy as jnp
from jax.experimental import pallas as pl
from jax.experimental.pallas import tpu as pltpu

NUM_COLS = 10  # the PyTorch loop sums j in range(10)


def _round_up(x, m):
    return ((x + m - 1) // m) * m


def _sublane_multiple(dtype):
    # native TPU sublane tiling: 8 rows for 4-byte, 16 for 2-byte, 32 for 1-byte
    return {4: 8, 2: 16, 1: 32}.get(jnp.dtype(dtype).itemsize, 8)


def _mse_kernel(d1_ref, d2_ref, out_ref, acc_ref, *,
                n_rows, tile_rows, blocks_per_split, num_cols, maybe_ragged):
    # d1_ref / d2_ref : (tile_rows, fb) input blocks (original dtype) in VMEM
    # out_ref         : (1, 1) float32 SMEM — this split's partial loss
    # acc_ref         : (8, fb) float32 VMEM accumulator (per split / per core)
    c = pl.program_id(0)   # megacore split axis ("parallel")
    i = pl.program_id(1)   # row-block reduction axis ("arbitrary")

    @pl.when(i == 0)
    def _init():
        acc_ref[...] = jnp.zeros_like(acc_ref)

    # In-kernel cast to f32 (halves DMA bytes for bf16 inputs; f32 math everywhere).
    diff = d1_ref[...].astype(jnp.float32) - d2_ref[...].astype(jnp.float32)
    sq = diff * diff
    tm, fb = sq.shape  # static

    def fold(x):
        # (tm, fb) -> (tm//8, 8, fb) -> sum over leading axis: pure VALU adds,
        # no cross-sublane/lane work in the hot loop.
        return x.reshape(tm // 8, 8, fb).sum(axis=0)

    if maybe_ragged:
        # Global block id (unclamped); blocks past the array (index_map clamps
        # the DMA) and the ragged last block are zero-masked here.
        row_start = (c * blocks_per_split + i) * tile_rows

        @pl.when(row_start + tile_rows <= n_rows)
        def _acc_full():
            acc_ref[...] += fold(sq)

        @pl.when(row_start + tile_rows > n_rows)
        def _acc_ragged():
            rows = jax.lax.broadcasted_iota(jnp.int32, sq.shape, 0) + row_start
            acc_ref[...] += fold(jnp.where(rows < n_rows, sq, 0.0))
    else:
        acc_ref[...] += fold(sq)

    @pl.when(i == pl.num_programs(1) - 1)
    def _finalize():
        a = acc_ref[...]
        if num_cols < fb:
            # Column mask hoisted out of the hot loop: O(fb) work, once.
            cols = jax.lax.broadcasted_iota(jnp.int32, a.shape, 1)
            a = jnp.where(cols < num_cols, a, 0.0)
        out_ref[0, 0] = 0.5 * jnp.sum(a)


def mse_loss(distribution1, distribution2, *, force_kernel=False):
    """Pallas equivalent of the PyTorch mseLoss() forward."""
    d1 = jnp.squeeze(distribution1)
    d2 = jnp.squeeze(distribution2)
    assert d1.shape == d2.shape, "squeezed shapes must match"
    # The PyTorch reference indexes distribution[i][j]; require (N, F>=10).
    assert d1.ndim == 2 and d1.shape[1] >= NUM_COLS, "need (N, F>=10) after squeeze"

    n, f = d1.shape

    # ---- tiny-input fast path: launch overhead >> compute ----
    if not force_kernel and n * f <= 4096:
        r1 = d1.astype(jnp.float32)[:, :NUM_COLS]
        r2 = d2.astype(jnp.float32)[:, :NUM_COLS]
        return (0.5 * jnp.sum((r1 - r2) ** 2)).reshape(1)

    # ---- wide feature dims: stream only the 10 used columns ----
    if f > 128:
        d1 = d1[:, :NUM_COLS]
        d2 = d2[:, :NUM_COLS]
        f = NUM_COLS
    fb = f  # block last dim == full (<=128) array last dim -> lane-legal

    # dtype-dependent sublane multiple (most restrictive of the two inputs)
    sub = max(_sublane_multiple(d1.dtype), _sublane_multiple(d2.dtype))

    # Only for tiny forced-kernel inputs: zero-pad rows up to one sublane tile
    # (zero rows contribute exactly 0 to the loss).
    if n < sub:
        d1 = jnp.pad(d1, ((0, sub - n), (0, 0)))
        d2 = jnp.pad(d2, ((0, sub - n), (0, 0)))
    n_p = max(n, sub)

    # ---- row tile sized from a VMEM byte budget ----
    lane_pad = _round_up(fb, 128)
    bytes_per_row = lane_pad * (jnp.dtype(d1.dtype).itemsize
                                + jnp.dtype(d2.dtype).itemsize)
    live_budget = 16 * 1024 * 1024            # double-buffered input bytes target
    tm_max = max(sub, (live_budget // (2 * bytes_per_row)) // sub * sub)
    tm = min(tm_max, 8192, (n_p // sub) * sub)  # largest sub-multiple <= n_p

    n_blocks = pl.cdiv(n_p, tm)
    num_splits = 2 if n_blocks >= 2 else 1    # v7x megacore; harmless on v5e/v6e
    bpc = pl.cdiv(n_blocks, num_splits)

    maybe_ragged = (n_p % tm != 0) or (n_blocks % num_splits != 0)

    kernel = functools.partial(
        _mse_kernel,
        n_rows=n_p,
        tile_rows=tm,
        blocks_per_split=bpc,
        num_cols=NUM_COLS,
        maybe_ragged=maybe_ragged,
    )

    def in_map(c, i):
        # Clamp so duplicated tail blocks (odd block count split over 2 cores)
        # re-read a valid block; the kernel row-masks them to zero.
        return (jnp.minimum(c * bpc + i, n_blocks - 1), 0)

    in_bytes = jnp.dtype(d1.dtype).itemsize + jnp.dtype(d2.dtype).itemsize
    cost = pl.CostEstimate(
        flops=3 * n_p * fb,
        transcendentals=0,
        bytes_accessed=n_p * fb * in_bytes + 4 * num_splits,
    )

    out = pl.pallas_call(
        kernel,
        out_shape=jax.ShapeDtypeStruct((num_splits, 1), jnp.float32),
        grid_spec=pltpu.PrefetchScalarGridSpec(
            num_scalar_prefetch=0,
            grid=(num_splits, bpc),
            in_specs=[
                pl.BlockSpec((tm, fb), in_map),
                pl.BlockSpec((tm, fb), in_map),
            ],
            out_specs=pl.BlockSpec(
                (1, 1), lambda c, i: (c, 0),
                memory_space=pltpu.MemorySpace.SMEM,
            ),
            scratch_shapes=[pltpu.VMEM((8, fb), jnp.float32)],
        ),
        compiler_params=pltpu.CompilerParams(
            dimension_semantics=("parallel", "arbitrary"),
            vmem_limit_bytes=32 * 1024 * 1024,
        ),
        cost_estimate=cost,
    )(d1, d2)

    # per-split partials -> scalar loss, shape (1,) like torch.zeros([1])
    return jnp.sum(out, dtype=jnp.float32).reshape(1)


def _reference(d1, d2):
    # Pure-JAX reference with identical math to the PyTorch loop.
    r1 = jnp.squeeze(d1).astype(jnp.float32)[:, :NUM_COLS]
    r2 = jnp.squeeze(d2).astype(jnp.float32)[:, :NUM_COLS]
    per_row = 0.5 * jnp.sum((r1 - r2) ** 2, axis=1)
    return jnp.sum(per_row).reshape(1)


if __name__ == "__main__":
    key = jax.random.PRNGKey(0)
    k1, k2, k3, k4, k5, k6 = jax.random.split(key, 6)

    # Case 1: module-sized workload — 8 distributions over 10 classes with a
    # singleton dim removed by .squeeze().  Check both the fused fast path and
    # the forced Pallas kernel path.
    d1 = jax.random.normal(k1, (8, 1, 10), dtype=jnp.float32)
    d2 = jax.random.normal(k2, (8, 1, 10), dtype=jnp.float32)
    ref1 = _reference(d1, d2)
    fast = jax.block_until_ready(mse_loss(d1, d2))
    kern = jax.block_until_ready(mse_loss(d1, d2, force_kernel=True))
    assert fast.shape == (1,) and fast.dtype == jnp.float32
    assert kern.shape == (1,) and kern.dtype == jnp.float32
    assert jnp.allclose(fast, ref1, rtol=1e-5, atol=1e-5), (fast, ref1)
    assert jnp.allclose(kern, ref1, rtol=1e-5, atol=1e-5), (kern, ref1)

    # Case 2: bf16 inputs, F=16 > 10, row count not a tile multiple —
    # exercises in-kernel cast, hoisted column mask, ragged-block row mask and
    # the two-way ("parallel") split with per-split partial outputs.
    e1 = jax.random.normal(k3, (300, 1, 16), dtype=jnp.float32).astype(jnp.bfloat16)
    e2 = jax.random.normal(k4, (300, 1, 16), dtype=jnp.float32).astype(jnp.bfloat16)
    l2 = jax.block_until_ready(mse_loss(e1, e2))
    ref2 = _reference(e1, e2)
    assert jnp.allclose(l2, ref2, rtol=1e-4, atol=1e-4), (l2, ref2)

    # Case 3: wide feature dim (F > 128) — wrapper pre-slices to the 10 used
    # columns so the kernel streams only the needed HBM bytes.
    w1 = jax.random.normal(k5, (257, 1, 200), dtype=jnp.float32)
    w2 = jax.random.normal(k6, (257, 1, 200), dtype=jnp.float32)
    l3 = jax.block_until_ready(mse_loss(w1, w2))
    ref3 = _reference(w1, w2)
    assert jnp.allclose(l3, ref3, rtol=1e-5, atol=1e-5), (l3, ref3)

    print("KERNEL_OK")
</pallas_src>

<mosaic_0001>
module attributes {stable_mosaic.version = 11 : i64} {
  func.func @_mse_kernel(%arg0: i32, %arg1: i32, %arg2: memref<8x10xf32, #tpu.memory_space<vmem>>, %arg3: memref<8x10xf32, #tpu.memory_space<vmem>>, %arg4: memref<1x1xf32, #tpu.memory_space<smem>>, %arg5: memref<8x10xf32, #tpu.memory_space<vmem>>) attributes {dimension_semantics = [#tpu.dimension_semantics<parallel>, #tpu.dimension_semantics<arbitrary>], iteration_bounds = array<i64: 1, 1>, scalar_prefetch = 0 : i64, scratch_operands = 1 : i64, tpu.core_type = #tpu.core_type<tc>, window_params = [{transform_indices = @transform_0, window_bounds = array<i64: 8, 10>}, {transform_indices = @transform_1, window_bounds = array<i64: 8, 10>}, {transform_indices = @transform_2, window_bounds = array<i64: 1, 1>}]} {
    %c0_i32 = arith.constant 0 : i32
    %0 = arith.cmpi eq, %arg1, %c0_i32 : i32
    %1 = arith.extui %0 : i1 to i32
    %c0_i32_0 = arith.constant 0 : i32
    %2 = arith.cmpi ne, %1, %c0_i32_0 : i32
    scf.if %2 {
      %cst_10 = arith.constant 0.000000e+00 : f32
      %15 = vector.broadcast %cst_10 : f32 to vector<8x10xf32>
      %c0_11 = arith.constant 0 : index
      %c0_12 = arith.constant 0 : index
      %16 = vector.load %arg5[%c0_11, %c0_12] : memref<8x10xf32, #tpu.memory_space<vmem>>, vector<8x10xf32>
      tpu.vector_store %arg5[%c0_11, %c0_12], %15 {strides = array<i32>} : memref<8x10xf32, #tpu.memory_space<vmem>>, vector<8x10xf32>,
    } else {
    }
    %c0 = arith.constant 0 : index
    %c0_1 = arith.constant 0 : index
    %3 = vector.load %arg2[%c0, %c0_1] : memref<8x10xf32, #tpu.memory_space<vmem>>, vector<8x10xf32>
    %c0_2 = arith.constant 0 : index
    %c0_3 = arith.constant 0 : index
    %4 = vector.load %arg3[%c0_2, %c0_3] : memref<8x10xf32, #tpu.memory_space<vmem>>, vector<8x10xf32>
    %5 = arith.subf %3, %4 : vector<8x10xf32>
    %6 = arith.mulf %5, %5 : vector<8x10xf32>
    %c0_4 = arith.constant 0 : index
    %c0_5 = arith.constant 0 : index
    %7 = vector.load %arg5[%c0_4, %c0_5] : memref<8x10xf32, #tpu.memory_space<vmem>>, vector<8x10xf32>
    %8 = vector.shape_cast %6 : vector<8x10xf32> to vector<1x8x10xf32>
    %cst = arith.constant dense<0.000000e+00> : vector<8x10xf32>
    %9 = vector.multi_reduction <add>, %8, %cst [0] : vector<1x8x10xf32> to vector<8x10xf32>
    %10 = arith.addf %7, %9 : vector<8x10xf32>
    %c0_6 = arith.constant 0 : index
    %c0_7 = arith.constant 0 : index
    %11 = vector.load %arg5[%c0_6, %c0_7] : memref<8x10xf32, #tpu.memory_space<vmem>>, vector<8x10xf32>
    tpu.vector_store %arg5[%c0_6, %c0_7], %10 {strides = array<i32>} : memref<8x10xf32, #tpu.memory_space<vmem>>, vector<8x10xf32>,
    %c0_i32_8 = arith.constant 0 : i32
    %12 = arith.cmpi eq, %arg1, %c0_i32_8 : i32
    %13 = arith.extui %12 : i1 to i32
    %c0_i32_9 = arith.constant 0 : i32
    %14 = arith.cmpi ne, %13, %c0_i32_9 : i32
    scf.if %14 {
      %c0_10 = arith.constant 0 : index
      %c0_11 = arith.constant 0 : index
      %15 = vector.load %arg5[%c0_10, %c0_11] : memref<8x10xf32, #tpu.memory_space<vmem>>, vector<8x10xf32>
      %16 = vector.shape_cast %15 : vector<8x10xf32> to vector<1x8x10xf32>
      %cst_12 = arith.constant dense<0.000000e+00> : vector<1xf32>
      %17 = vector.multi_reduction <add>, %16, %cst_12 [1, 2] : vector<1x8x10xf32> to vector<1xf32>
      %18 = vector.shape_cast %17 : vector<1xf32> to vector<1x1x1xf32>
      %19 = vector.extract %18[0, 0, 0] : f32 from vector<1x1x1xf32>
      %cst_13 = arith.constant 5.000000e-01 : f32
      %20 = arith.mulf %cst_13, %19 : f32
      %c0_14 = arith.constant 0 : index
      %c0_15 = arith.constant 0 : index
      %21 = memref.load %arg4[%c0_14, %c0_15] : memref<1x1xf32, #tpu.memory_space<smem>>
      memref.store %20, %arg4[%c0_14, %c0_15] : memref<1x1xf32, #tpu.memory_space<smem>>
    } else {
    }
    return
  }
  func.func @transform_0(%arg0: i32, %arg1: i32) -> (i32, i32) {
    %c1_i32 = arith.constant 1 : i32
    %0 = arith.muli %arg0, %c1_i32 : i32
    %1 = arith.addi %0, %arg1 : i32
    %c0_i32 = arith.constant 0 : i32
    %2 = arith.minsi %1, %c0_i32 : i32
    %c0_i32_0 = arith.constant 0 : i32
    %c0_i32_1 = arith.constant 0 : i32
    return %2, %c0_i32_0 : i32, i32
  }
  func.func @transform_1(%arg0: i32, %arg1: i32) -> (i32, i32) {
    %c1_i32 = arith.constant 1 : i32
    %0 = arith.muli %arg0, %c1_i32 : i32
    %1 = arith.addi %0, %arg1 : i32
    %c0_i32 = arith.constant 0 : i32
    %2 = arith.minsi %1, %c0_i32 : i32
    %c0_i32_0 = arith.constant 0 : i32
    %c0_i32_1 = arith.constant 0 : i32
    return %2, %c0_i32_0 : i32, i32
  }
  func.func @transform_2(%arg0: i32, %arg1: i32) -> (i32, i32) {
    %c0_i32 = arith.constant 0 : i32
    %c0_i32_0 = arith.constant 0 : i32
    return %arg0, %c0_i32 : i32, i32
  }
}

</mosaic_0001>

<bundles_post_ra>
// kernel: tpu_custom_call.1
= control target key start
LH: loop header
LB: loop body
LE: loop exit
PB: predicated region body
PF: predicated region fallthrough
CT: control target
= control target key end

     0   :  { %7 = vsyncpa [#allocation4], 0  ;;  %s224_s0 = inlined_call_operand.hbm [shape: f32[8,10], index: 0, kind: input, shape index: {}]   ;;  %s225_s1 = inlined_call_operand.hbm [shape: f32[8,10], index: 1, kind: input, shape index: {}]   ;;  %s226_s2 = inlined_call_operand.hbm [shape: f32[1,1], index: 2, kind: output, shape index: {}]  }
   0x1   :  { %8 = vsyncpa [#allocation7], 0 }
   0x2   :  { %9 = vsyncpa [#allocation5], 0  ;;  %s169_s9 = smov [#allocation3]   ;;  %s170_s11 = smov [#allocation6]  }
   0x3   :  { %s21_s10 = sshll.u32 %s169_s9, 4  ;;  %s36_s12 = sshll.u32 %s170_s11, 4  ;;  %s22_s10 = int_to_ptr.vmem [resolvable:$true] %s21_s10  ;;  %s37_s12 = int_to_ptr.vmem [resolvable:$true] %s36_s12 }
   0x4   :  { %s109_s15 = scalar_lea.hbm %s224_s0, 128 }
   0x5   :  { %p110_p0 = scmp.ne.s32.totalorder %s224_s0, %s109_s15  ;;  %p113_p1 = scmp.lt.u32.totalorder %s109_s15, %s224_s0 }
   0x7   :  { %p115_p2 = pnand %p113_p1, %p110_p0 }
   0x9   :  { %118 = shalt.err (!%p115_p2)
}
   0xa   :  { %s119_s20 = scalar_lea.vmem %s22_s10, 128  ;;  %p124_p4 = scmp.lt.s32.totalorder %s22_s10, %s22_s10 }
   0xb   :  { %p120_p3 = scmp.ne.s32.totalorder %s22_s10, %s119_s20  ;;  %p125_p5 = scmp.lt.s32.totalorder %s119_s20, %s119_s20 }
   0xd   :  { %p126_p6 = por %p125_p5, %p124_p4 }
   0xf   :  { %p127_p7 = pnand %p126_p6, %p120_p3 }
  0x11   :  { %130 = shalt.err (!%p127_p7)
}
  0x12   :  { %24 = dma.hbm_to_vmem [thread:$0]  %s224_s0, 128, %s22_s10, [#allocation4]  }
  0x13   :  { %s131_s25 = scalar_lea.hbm %s225_s1, 128 }
  0x14   :  { %p132_p8 = scmp.ne.s32.totalorder %s225_s1, %s131_s25  ;;  %p135_p9 = scmp.lt.u32.totalorder %s131_s25, %s225_s1 }
  0x16   :  { %p137_p10 = pnand %p135_p9, %p132_p8 }
  0x18   :  { %140 = shalt.err (!%p137_p10)
}
  0x19   :  { %s141_s30 = scalar_lea.vmem %s37_s12, 128  ;;  %p146_p12 = scmp.lt.s32.totalorder %s37_s12, %s37_s12 }
  0x1a   :  { %p142_p11 = scmp.ne.s32.totalorder %s37_s12, %s141_s30  ;;  %p147_p13 = scmp.lt.s32.totalorder %s141_s30, %s141_s30 }
  0x1c   :  { %p148_p0 = por %p147_p13, %p146_p12 }
  0x1e   :  { %p149_p1 = pnand %p148_p0, %p142_p11 }
  0x20   :  { %152 = shalt.err (!%p149_p1)
}
  0x21   :  { %39 = dma.hbm_to_vmem [thread:$0]  %s225_s1, 128, %s37_s12, [#allocation7]  }
  0x22   :  { %163 = dma.done.wait [#allocation4], 128  }
  0x23   :  { %164 = vsyncadd [#allocation4], 4294967168 }
  0x24   :  { %165 = dma.done.wait [#allocation7], 128  }
  0x25   :  { %166 = vsyncadd [#allocation7], 4294967168  ;;  %vm56_vm0 = vcmask 80896   ;;  %v171_v0 = vmov 0.0   ;;  %v58_v1 = vld [vmem:[#allocation3] sm:$0xff]  ;;  %v59_v2 = vld [vmem:[#allocation6] sm:$0xff] }
  0x26   :  { %57 = vst.msk [vmem:[#allocation2] sm:$0xff] %vm56_vm0, %v171_v0  ;;  %v60_v3 = vsub.f32 %v58_v1, %v59_v2  ;;  %s153_s7 = scalar_lea.hbm %s226_s2, 16 }
  0x27   :  { %p154_p2 = scmp.ne.s32.totalorder %s226_s2, %s153_s7  ;;  %p157_p3 = scmp.lt.u32.totalorder %s153_s7, %s226_s2 }
  0x28   :  { %v61_v5 = vmul.f32 %v60_v3, %v60_v3 }
  0x29   :  { %p159_p4 = pnand %p157_p3, %p154_p2 }
  0x2d   :  { %v62_v4 = vld [vmem:[#allocation2] sm:$0xff] }
  0x2e   :  { %v64_v6 = vadd.f32 %v62_v4, %v61_v5 }
  0x30   :  { %66 = vst.msk [vmem:[#allocation2] sm:$0xff] %vm56_vm0, %v64_v6 }
  0x37   :  { %v70_v7 = vld [vmem:[#allocation2] sm:$0xff] }
  0x38   :  { %v71_v8 = vsel %vm56_vm0, %v70_v7, 0.0 }
  0x39   :  { %72 = vadd.xlane.f32.xlu0 %v71_v8 }
  0xc6   :  { %v73_v9 = vpop.xlane.xlu0 %72 }
  0xc7   :  { %v74_v10 = vrot.slane %v73_v9, 4 }
  0xc9   :  { %v75_v11 = vadd.f32 %v74_v10, %v73_v9 }
  0xcb   :  { %v76_v12 = vrot.slane %v75_v11, 2 }
  0xcd   :  { %v77_v13 = vadd.f32 %v76_v12, %v75_v11 }
  0xcf   :  { %v78_v14 = vrot.slane %v77_v13, 1 }
  0xd1   :  { %v79_v15 = vadd.f32 %v78_v14, %v77_v13 }
  0xd3   :  { %103 = vpush %v79_v15 }
 0x104   :  { %s104_s1 = spop %103 }
 0x105   :  { %s81_s4 = smul.f32 0.5, %s104_s1 }
 0x107   :  { %83 = sst [smem:[#allocation8]] %s81_s4 }
 0x108   :  { %162 = shalt.err (!%p159_p4)
}
 0x109   :  { %s172_s12 = smov [#allocation8]  }
 0x10a   :  { %91 = dma.smem_to_hbm %s172_s12, 16, %s226_s2, [#allocation5]  }
 0x10b   :  { %167 = dma.done.wait [#allocation5], 16  }
 0x10c   :  { %168 = vsyncadd [#allocation5], 4294967280 }
 0x10d   :  { %95 = sfence }
 0x10e   :  { %96 = vsyncpa [#allocation4], 1 }
 0x10f   :  { %97 = vsyncpa [#allocation7], 1 }
 0x110   :  { %98 = vsyncpa [#allocation5], 1 }

</bundles_post_ra>
